<compile_context>
chip_gen: v5e
topology: v5e:2x2
jax: 0.10.0
libtpu: 0.0.40
codegen_flags: <defaults>
</compile_context>

<pallas_src>
import functools

import jax
import jax.numpy as jnp
from jax import lax
from jax.experimental import pallas as pl
from jax.experimental.pallas import tpu as pltpu


# ---------------------------------------------------------------------------
# Helpers: VMEM budgeting / tile selection (generation-aware)
# ---------------------------------------------------------------------------
def _round_up(x, m):
    return ((x + m - 1) // m) * m


def _vmem_capacity_bytes():
    try:
        return int(pltpu.get_tpu_info().vmem_capacity_bytes)
    except Exception:
        return 64 << 20          # conservative: v7x per-TensorCore VMEM


def _conv_vmem_bytes(nIn, CO, k, tt, x_b, y_b, w_b, pad):
    n_x = 3 if pad > 0 else 1
    blocks = 2 * n_x * nIn * tt * x_b + 2 * CO * tt * y_b     # double-buffered I/O tiles
    stats = 2 * 8 * tt * 4                                    # resident stats block (padded)
    params = 2 * (k * CO * nIn * w_b + CO * 128 * 4)          # weights + bias
    temps = (6 * nIn * tt + 3 * CO * tt) * 4                  # rolled operands + f32 acc
    return blocks + stats + params + temps


def _norm_vmem_bytes(nOut, tt, io_b):
    return 4 * nOut * tt * io_b + 3 * nOut * tt * 4 + 6 * nOut * 128 * 4


def _pick_conv_tile(T, nIn, CO, k, pad, x_b, y_b, w_b, max_time_tile, budget):
    t_cap = _round_up(T, 128)
    tt = min(_round_up(max(int(max_time_tile), 128), 128), t_cap)
    while tt > 128 and _conv_vmem_bytes(nIn, CO, k, tt, x_b, y_b, w_b, pad) > budget:
        tt -= 128
    return tt


def _pick_norm_tile(T, nOut, io_b, budget, cap_tile=8192):
    t_cap = _round_up(T, 128)
    tt = min(_round_up(cap_tile, 128), t_cap)
    while tt > 128 and _norm_vmem_bytes(nOut, tt, io_b) > budget:
        tt -= 128
    return tt


# ---------------------------------------------------------------------------
# Pass 1: tiled Conv1d (per-tap accumulating matmuls) + per-batch stat partials.
# ---------------------------------------------------------------------------
def _make_conv_stats_kernel(k, pad, TT, T, nT, compute_dtype):
    needs_col_mask = (T % TT) != 0          # last tile is ragged
    last_width = T - (nT - 1) * TT
    right_edge_needs_mask = needs_col_mask and (last_width < pad)

    def kernel(*refs):
        if pad > 0:
            xc_ref, xp_ref, xn_ref, w_ref, b_ref, y_ref, stats_ref = refs
        else:
            xc_ref, w_ref, b_ref, y_ref, stats_ref = refs
            xp_ref = xn_ref = None

        t = pl.program_id(2)
        lane = lax.broadcasted_iota(jnp.int32, (1, TT), 1)

        # zero the resident per-(batch, chunk) stats block at the first time step
        @pl.when(t == 0)
        def _init_stats():
            stats_ref[...] = jnp.zeros(stats_ref.shape, stats_ref.dtype)

        def emit(is_last_tile):
            xc = xc_ref[0].astype(compute_dtype)
            in_valid = None
            if is_last_tile and needs_col_mask:
                in_valid = (t * TT + lane) < T
                xc = jnp.where(in_valid, xc, jnp.zeros_like(xc))
            if pad > 0:
                xp = xp_ref[0].astype(compute_dtype)
                xn = xn_ref[0].astype(compute_dtype)

            # ---- k taps: per-tap accumulating MXU matmuls; shifted operands via
            # pltpu.roll + one lane-masked select for the halo lanes ----
            acc = None
            for j in range(k):
                s = j - pad
                if s == 0:
                    op = xc
                else:
                    shift = (-s) % TT
                    cr = pltpu.roll(xc, shift=shift, axis=1)
                    if s < 0:
                        # left halo: last |s| columns of tile t-1 (zeros at batch edge)
                        lp = pltpu.roll(xp, shift=shift, axis=1)
                        lp = jnp.where(t > 0, lp, jnp.zeros_like(lp))
                        op = jnp.where(lane < (-s), lp, cr)
                    else:
                        # right halo: first s columns of tile t+1 (zeros past T)
                        if is_last_tile:
                            rp = jnp.zeros_like(cr)
                        else:
                            rp = pltpu.roll(xn, shift=shift, axis=1)
                            if right_edge_needs_mask:
                                r_valid = (t * TT + lane + s) < T
                                rp = jnp.where(r_valid, rp, jnp.zeros_like(rp))
                        op = jnp.where(lane >= (TT - s), rp, cr)
                pj = jnp.dot(w_ref[j], op, preferred_element_type=jnp.float32)
                acc = pj if acc is None else acc + pj

            acc = acc + b_ref[...].astype(jnp.float32)       # (CO, TT) + (CO, 1)
            y_ref[0] = acc.astype(y_ref.dtype)

            # ---- per-lane stat partials: channel-axis reduce only (no cross-lane
            # reduction in the loop); final reduction happens in the wrapper ----
            if in_valid is not None:
                vm = in_valid.astype(jnp.float32)
                s1 = jnp.sum(acc * vm, axis=0, keepdims=True)
                s2 = jnp.sum(acc * acc * vm, axis=0, keepdims=True)
            else:
                s1 = jnp.sum(acc, axis=0, keepdims=True)
                s2 = jnp.sum(acc * acc, axis=0, keepdims=True)
            stats_ref[0, 0] = stats_ref[0, 0] + jnp.concatenate([s1, s2], axis=0)

        if pad > 0 or needs_col_mask:
            # interior tiles pay zero edge-mask cost; only the last tile masks
            @pl.when(t < nT - 1)
            def _interior():
                emit(False)

            @pl.when(t == nT - 1)
            def _last():
                emit(True)
        else:
            emit(False)

    return kernel


# ---------------------------------------------------------------------------
# Pass 2: out = scale * y + shift, optional PReLU folded in (one FMA + select).
# ---------------------------------------------------------------------------
def _norm_act_kernel(y_ref, sc_ref, sh_ref, a_ref, o_ref):
    z = (sc_ref[0].astype(jnp.float32) * y_ref[0].astype(jnp.float32)
         + sh_ref[0].astype(jnp.float32))
    a = a_ref[...].astype(jnp.float32)           # (nOut, 1); a == 1 -> identity
    z = jnp.where(z >= 0.0, z, a * z)
    o_ref[0] = z.astype(o_ref.dtype)


# ---------------------------------------------------------------------------
# Wrapper
# ---------------------------------------------------------------------------
def conv_glob_ln(x, weight, bias, gamma, beta, prelu_alpha=None, *,
                 eps=1e-8, max_time_tile=2048, vmem_budget_bytes=None,
                 nout_chunks=None, matmul_dtype=None):
    """Conv1d(stride=1, groups=1, odd kSize, 'same') + GlobLN (+ optional PReLU).

    x: (B, nIn, T); weight: (nOut, nIn, kSize) (torch layout); bias/gamma/beta: (nOut,).
    prelu_alpha: None (no activation) or per-channel / scalar PReLU weight.
    matmul_dtype: set to jnp.bfloat16 on v6e/v7x for the fast MXU path (f32 accum).
    nout_chunks: extra parallel grid axis over nOut (feeds both v7x cores at B==1).
    """
    B, nIn, T = x.shape
    nOut, nIn_w, k = weight.shape
    assert nIn_w == nIn, "weight / input channel mismatch"
    assert k % 2 == 1, "odd kernel sizes only (as used by the module)"
    pad = (k - 1) // 2

    x_dtype = x.dtype
    x_b = jnp.dtype(x_dtype).itemsize
    if matmul_dtype is None:
        matmul_dtype = x_dtype
    matmul_dtype = jnp.dtype(matmul_dtype)
    w_b = matmul_dtype.itemsize
    y_b = x_b

    # --- nOut-chunk parallel axis (targets v7x's two TensorCores when B == 1) ---
    if nout_chunks is None:
        nout_chunks = 2 if (B == 1 and nOut % 16 == 0) else 1
    if (nout_chunks < 1 or nOut % nout_chunks != 0
            or (nout_chunks > 1 and (nOut // nout_chunks) % 8 != 0)):
        nout_chunks = 1
    nC = nout_chunks
    CO = nOut // nC

    # --- generation-aware VMEM budgeting (64 MiB on v7x, 128 MiB on v5e/v6e) ---
    cap = _vmem_capacity_bytes()
    if vmem_budget_bytes is None:
        vmem_budget_bytes = min(int(cap * 0.45), 56 << 20)
    budget = int(vmem_budget_bytes)

    TT = _pick_conv_tile(T, nIn, CO, k, pad, x_b, y_b, w_b, max_time_tile, budget)
    nT = pl.cdiv(T, TT)

    # parameter plumbing: torch (nOut, nIn, k) -> per-tap (k, nOut, nIn)
    w_taps = jnp.transpose(weight, (2, 0, 1)).astype(matmul_dtype)
    b2 = bias.reshape(nOut, 1).astype(jnp.float32)

    vmem1 = _conv_vmem_bytes(nIn, CO, k, TT, x_b, y_b, w_b, pad) + (4 << 20)
    vmem1 = int(max(16 << 20, min(vmem1, int(cap * 0.9))))

    conv_kernel = _make_conv_stats_kernel(k, pad, TT, T, nT, matmul_dtype)

    in_specs = [pl.BlockSpec((1, nIn, TT), lambda b, c, t: (b, 0, t))]
    if pad > 0:
        in_specs += [
            pl.BlockSpec((1, nIn, TT), lambda b, c, t: (b, 0, jnp.maximum(t - 1, 0))),
            pl.BlockSpec((1, nIn, TT), lambda b, c, t: (b, 0, jnp.minimum(t + 1, nT - 1))),
        ]
    in_specs += [
        pl.BlockSpec((k, CO, nIn), lambda b, c, t: (0, c, 0)),   # resident weights
        pl.BlockSpec((CO, 1), lambda b, c, t: (c, 0)),           # resident bias
    ]
    n_x = 3 if pad > 0 else 1
    args = [x, x, x, w_taps, b2] if pad > 0 else [x, w_taps, b2]

    y, stats = pl.pallas_call(
        conv_kernel,
        out_shape=(jax.ShapeDtypeStruct((B, nOut, T), x_dtype),
                   jax.ShapeDtypeStruct((B, nC, 2, TT), jnp.float32)),
        grid_spec=pltpu.PrefetchScalarGridSpec(
            num_scalar_prefetch=0,
            grid=(B, nC, nT),
            in_specs=in_specs,
            out_specs=[
                pl.BlockSpec((1, CO, TT), lambda b, c, t: (b, c, t)),
                pl.BlockSpec((1, 1, 2, TT), lambda b, c, t: (b, c, 0, 0)),
            ],
        ),
        compiler_params=pltpu.CompilerParams(
            dimension_semantics=("parallel", "parallel", "arbitrary"),
            vmem_limit_bytes=vmem1),
        cost_estimate=pl.CostEstimate(
            flops=2 * B * nOut * k * nIn * T,
            transcendentals=0,
            bytes_accessed=B * T * (n_x * nIn * x_b + nOut * y_b)
                           + nOut * k * nIn * w_b),
    )(*args)

    # tiny O(B*nOut) work: fold GlobLN into one FMA per element
    s1 = jnp.sum(stats[:, :, 0, :], axis=(1, 2))          # (B,)
    s2 = jnp.sum(stats[:, :, 1, :], axis=(1, 2))
    cnt = jnp.float32(nOut * T)
    mean = s1 / cnt
    var = jnp.maximum(s2 / cnt - mean * mean, 0.0)
    inv_std = lax.rsqrt(var + eps)
    scale = gamma.astype(jnp.float32)[None, :] * inv_std[:, None]        # (B, nOut)
    shift = beta.astype(jnp.float32)[None, :] - scale * mean[:, None]
    scale = scale[..., None]                                             # (B, nOut, 1)
    shift = shift[..., None]
    if prelu_alpha is None:
        alpha2 = jnp.ones((nOut, 1), jnp.float32)                        # identity
    else:
        alpha2 = jnp.broadcast_to(
            jnp.asarray(prelu_alpha, jnp.float32).reshape(-1, 1), (nOut, 1))

    # --- pass 2: mem-bound normalize, its own (larger) time tile, y aliased out ---
    TT2 = _pick_norm_tile(T, nOut, x_b, budget)
    nT2 = pl.cdiv(T, TT2)
    vmem2 = _norm_vmem_bytes(nOut, TT2, x_b) + (2 << 20)
    vmem2 = int(max(8 << 20, min(vmem2, int(cap * 0.9))))

    out = pl.pallas_call(
        _norm_act_kernel,
        out_shape=jax.ShapeDtypeStruct((B, nOut, T), x_dtype),
        grid_spec=pltpu.PrefetchScalarGridSpec(
            num_scalar_prefetch=0,
            grid=(B, nT2),
            in_specs=[
                pl.BlockSpec((1, nOut, TT2), lambda b, t: (b, 0, t)),
                pl.BlockSpec((1, nOut, 1), lambda b, t: (b, 0, 0)),
                pl.BlockSpec((1, nOut, 1), lambda b, t: (b, 0, 0)),
                pl.BlockSpec((nOut, 1), lambda b, t: (0, 0)),
            ],
            out_specs=pl.BlockSpec((1, nOut, TT2), lambda b, t: (b, 0, t)),
        ),
        compiler_params=pltpu.CompilerParams(
            dimension_semantics=("parallel", "parallel"),
            vmem_limit_bytes=vmem2),
        cost_estimate=pl.CostEstimate(
            flops=4 * B * nOut * T,
            transcendentals=0,
            bytes_accessed=2 * B * nOut * T * x_b),
        input_output_aliases={0: 0},          # y is consumed in place
    )(y, scale, shift, alpha2)
    return out


# ---------------------------------------------------------------------------
# Pure-JAX reference (matches the torch forward)
# ---------------------------------------------------------------------------
def conv_glob_ln_reference(x, weight, bias, gamma, beta, prelu_alpha=None, eps=1e-8):
    k = weight.shape[-1]
    pad = (k - 1) // 2
    y = lax.conv_general_dilated(
        x.astype(jnp.float32), weight.astype(jnp.float32),
        window_strides=(1,), padding=[(pad, pad)],
        dimension_numbers=("NCH", "OIH", "NCH"),
    ) + bias.astype(jnp.float32)[None, :, None]
    mean = jnp.mean(y, axis=(1, 2), keepdims=True)
    var = jnp.mean((y - mean) ** 2, axis=(1, 2), keepdims=True)
    z = (gamma.astype(jnp.float32)[None, :, None] * ((y - mean) / jnp.sqrt(var + eps))
         + beta.astype(jnp.float32)[None, :, None])
    if prelu_alpha is not None:
        a = jnp.broadcast_to(jnp.asarray(prelu_alpha, jnp.float32).reshape(-1),
                             (weight.shape[0],))
        z = jnp.where(z >= 0, z, a[None, :, None] * z)
    return z.astype(x.dtype)


# ---------------------------------------------------------------------------
# Demo / self-test
# ---------------------------------------------------------------------------
def _run_case(name, key, B, nIn, nOut, k, T, with_act, *,
              max_time_tile=2048, nout_chunks=None, matmul_dtype=None,
              atol=1e-3, rtol=1e-3):
    kx, kw, kb, kg, kbe = jax.random.split(key, 5)
    x = jax.random.normal(kx, (B, nIn, T), dtype=jnp.float32)
    bound = 1.0 / ((nIn * k) ** 0.5)
    w = jax.random.uniform(kw, (nOut, nIn, k), jnp.float32, -bound, bound)
    b = jax.random.uniform(kb, (nOut,), jnp.float32, -bound, bound)
    gamma = 1.0 + 0.1 * jax.random.normal(kg, (nOut,), jnp.float32)
    beta = 0.1 * jax.random.normal(kbe, (nOut,), jnp.float32)
    alpha = jnp.full((nOut,), 0.25, jnp.float32) if with_act else None

    fn = jax.jit(functools.partial(
        conv_glob_ln, max_time_tile=max_time_tile, nout_chunks=nout_chunks,
        matmul_dtype=matmul_dtype))
    out = fn(x, w, b, gamma, beta, alpha)
    out = jax.block_until_ready(out)

    ref = conv_glob_ln_reference(x, w, b, gamma, beta, prelu_alpha=alpha)
    assert out.shape == ref.shape, (name, out.shape, ref.shape)
    err = float(jnp.max(jnp.abs(out.astype(jnp.float32) - ref.astype(jnp.float32))))
    assert jnp.allclose(out, ref, atol=atol, rtol=rtol), f"{name}: max|err|={err}"
    return err


if __name__ == "__main__":
    key = jax.random.PRNGKey(0)
    ks = jax.random.split(key, 6)
    # (a) 1x1 conv + GlobLN + PReLU (proj_1x1 / transformer ffn), tiny ragged T
    _run_case("k1_act", ks[0], B=2, nIn=4, nOut=8, k=1, T=16, with_act=True)
    # (b) k=5 dense conv + GlobLN, three exact 128-wide tiles (interior halo path)
    _run_case("k5_exact", ks[1], B=2, nIn=6, nOut=16, k=5, T=384, with_act=False,
              max_time_tile=128)
    # (c) k=3 conv + GlobLN + PReLU, ragged last tile (masked-edge branch)
    _run_case("k3_ragged", ks[2], B=2, nIn=8, nOut=8, k=3, T=200, with_act=True,
              max_time_tile=128)
    # (d) k=5, last tile narrower than the halo (right-edge corner case)
    _run_case("k5_corner", ks[3], B=2, nIn=4, nOut=8, k=5, T=257, with_act=False,
              max_time_tile=128)
    # (e) B == 1 with the nOut-chunk parallel axis (dual-TensorCore path on v7x)
    _run_case("k3_chunks", ks[4], B=1, nIn=8, nOut=16, k=3, T=200, with_act=True,
              max_time_tile=128)
    # (f) bf16 MXU operands (the v6e/v7x fast path), looser tolerance
    _run_case("k3_bf16", ks[5], B=2, nIn=8, nOut=16, k=3, T=200, with_act=True,
              max_time_tile=128, matmul_dtype=jnp.bfloat16, atol=6e-2, rtol=6e-2)
    print("KERNEL_OK")
</pallas_src>

<mosaic_0001>
module attributes {stable_mosaic.version = 11 : i64} {
  func.func @kernel(%arg0: i32, %arg1: i32, %arg2: i32, %arg3: memref<1x4x128xf32, #tpu.memory_space<vmem>>, %arg4: memref<1x8x4xf32, #tpu.memory_space<vmem>>, %arg5: memref<8x1xf32, #tpu.memory_space<vmem>>, %arg6: memref<1x8x128xf32, #tpu.memory_space<vmem>>, %arg7: memref<1x1x2x128xf32, #tpu.memory_space<vmem>>) attributes {dimension_semantics = [#tpu.dimension_semantics<parallel>, #tpu.dimension_semantics<parallel>, #tpu.dimension_semantics<arbitrary>], iteration_bounds = array<i64: 2, 1, 1>, scalar_prefetch = 0 : i64, scratch_operands = 0 : i64, tpu.core_type = #tpu.core_type<tc>, window_params = [{transform_indices = @transform_0, window_bounds = array<i64: 1, 4, 128>}, {transform_indices = @transform_1, window_bounds = array<i64: 1, 8, 4>}, {transform_indices = @transform_2, window_bounds = array<i64: 8, 1>}, {transform_indices = @transform_3, window_bounds = array<i64: 1, 8, 128>}, {transform_indices = @transform_4, window_bounds = array<i64: 1, 1, 2, 128>}]} {
    %0 = tpu.iota {dimensions = array<i32: 1>} : vector<1x128xi32>
    %c0_i32 = arith.constant 0 : i32
    %1 = arith.cmpi eq, %arg2, %c0_i32 : i32
    %2 = arith.extui %1 : i1 to i32
    %c0_i32_0 = arith.constant 0 : i32
    %3 = arith.cmpi ne, %2, %c0_i32_0 : i32
    scf.if %3 {
      %cst = arith.constant 0.000000e+00 : f32
      %10 = vector.broadcast %cst : f32 to vector<1x1x2x128xf32>
      %c0 = arith.constant 0 : index
      %c0_5 = arith.constant 0 : index
      %c0_6 = arith.constant 0 : index
      %c0_7 = arith.constant 0 : index
      %11 = vector.load %arg7[%c0, %c0_5, %c0_6, %c0_7] : memref<1x1x2x128xf32, #tpu.memory_space<vmem>>, vector<1x1x2x128xf32>
      tpu.vector_store %arg7[%c0, %c0_5, %c0_6, %c0_7], %10 {strides = array<i32>} : memref<1x1x2x128xf32, #tpu.memory_space<vmem>>, vector<1x1x2x128xf32>,
    } else {
    }
    %c0_i32_1 = arith.constant 0 : i32
    %4 = arith.cmpi slt, %arg2, %c0_i32_1 : i32
    %5 = arith.extui %4 : i1 to i32
    %c0_i32_2 = arith.constant 0 : i32
    %6 = arith.cmpi ne, %5, %c0_i32_2 : i32
    scf.if %6 {
      %c0 = arith.constant 0 : index
      %c0_5 = arith.constant 0 : index
      %c0_6 = arith.constant 0 : index
      %10 = vector.load %arg3[%c0, %c0_5, %c0_6] : memref<1x4x128xf32, #tpu.memory_space<vmem>>, vector<1x4x128xf32>
      %11 = vector.shape_cast %10 : vector<1x4x128xf32> to vector<4x128xf32>
      %c0_7 = arith.constant 0 : index
      %c0_8 = arith.constant 0 : index
      %c0_9 = arith.constant 0 : index
      %12 = vector.load %arg4[%c0_7, %c0_8, %c0_9] : memref<1x8x4xf32, #tpu.memory_space<vmem>>, vector<1x8x4xf32>
      %13 = vector.shape_cast %12 : vector<1x8x4xf32> to vector<8x4xf32>
      %cst = arith.constant dense<0.000000e+00> : vector<8x128xf32>
      %14 = tpu.matmul %13, %11, %cst {dimension_numbers = #tpu.dot_dimension_numbers<[1], [0], [0], [1], [0, 0, 1, 1], [], []>} : vector<8x4xf32>, vector<4x128xf32>, vector<8x128xf32> -> vector<8x128xf32>
      %c0_10 = arith.constant 0 : index
      %c0_11 = arith.constant 0 : index
      %15 = vector.load %arg5[%c0_10, %c0_11] : memref<8x1xf32, #tpu.memory_space<vmem>>, vector<8x1xf32>
      %16 = vector.broadcast %15 : vector<8x1xf32> to vector<8x128xf32>
      %17 = arith.addf %14, %16 : vector<8x128xf32>
      %c0_12 = arith.constant 0 : index
      %c0_13 = arith.constant 0 : index
      %c0_14 = arith.constant 0 : index
      %18 = vector.load %arg6[%c0_12, %c0_13, %c0_14] : memref<1x8x128xf32, #tpu.memory_space<vmem>>, vector<1x8x128xf32>
      %19 = vector.shape_cast %18 : vector<1x8x128xf32> to vector<8x128xf32>
      %20 = vector.shape_cast %17 : vector<8x128xf32> to vector<1x8x128xf32>
      tpu.vector_store %arg6[%c0_12, %c0_13, %c0_14], %20 {strides = array<i32>} : memref<1x8x128xf32, #tpu.memory_space<vmem>>, vector<1x8x128xf32>,
      %cst_15 = arith.constant dense<0.000000e+00> : vector<128xf32>
      %21 = vector.multi_reduction <add>, %17, %cst_15 [0] : vector<8x128xf32> to vector<128xf32>
      %22 = vector.shape_cast %21 : vector<128xf32> to vector<1x128xf32>
      %23 = arith.mulf %17, %17 : vector<8x128xf32>
      %cst_16 = arith.constant dense<0.000000e+00> : vector<128xf32>
      %24 = vector.multi_reduction <add>, %23, %cst_16 [0] : vector<8x128xf32> to vector<128xf32>
      %25 = vector.shape_cast %24 : vector<128xf32> to vector<1x128xf32>
      %c0_17 = arith.constant 0 : index
      %c0_18 = arith.constant 0 : index
      %c0_19 = arith.constant 0 : index
      %c0_20 = arith.constant 0 : index
      %26 = vector.load %arg7[%c0_17, %c0_18, %c0_19, %c0_20] : memref<1x1x2x128xf32, #tpu.memory_space<vmem>>, vector<1x1x2x128xf32>
      %27 = vector.shape_cast %26 : vector<1x1x2x128xf32> to vector<2x128xf32>
      %28 = tpu.concatenate %22, %25 in 0 : vector<1x128xf32>, vector<1x128xf32> -> vector<2x128xf32>
      %29 = arith.addf %27, %28 : vector<2x128xf32>
      %c0_21 = arith.constant 0 : index
      %c0_22 = arith.constant 0 : index
      %c0_23 = arith.constant 0 : index
      %c0_24 = arith.constant 0 : index
      %30 = vector.load %arg7[%c0_21, %c0_22, %c0_23, %c0_24] : memref<1x1x2x128xf32, #tpu.memory_space<vmem>>, vector<1x1x2x128xf32>
      %31 = vector.shape_cast %30 : vector<1x1x2x128xf32> to vector<2x128xf32>
      %32 = vector.shape_cast %29 : vector<2x128xf32> to vector<1x1x2x128xf32>
      tpu.vector_store %arg7[%c0_21, %c0_22, %c0_23, %c0_24], %32 {strides = array<i32>} : memref<1x1x2x128xf32, #tpu.memory_space<vmem>>, vector<1x1x2x128xf32>,
    } else {
    }
    %c0_i32_3 = arith.constant 0 : i32
    %7 = arith.cmpi eq, %arg2, %c0_i32_3 : i32
    %8 = arith.extui %7 : i1 to i32
    %c0_i32_4 = arith.constant 0 : i32
    %9 = arith.cmpi ne, %8, %c0_i32_4 : i32
    scf.if %9 {
      %c0 = arith.constant 0 : index
      %c0_5 = arith.constant 0 : index
      %c0_6 = arith.constant 0 : index
      %10 = vector.load %arg3[%c0, %c0_5, %c0_6] : memref<1x4x128xf32, #tpu.memory_space<vmem>>, vector<1x4x128xf32>
      %11 = vector.shape_cast %10 : vector<1x4x128xf32> to vector<4x128xf32>
      %c128_i32 = arith.constant 128 : i32
      %12 = arith.muli %arg2, %c128_i32 : i32
      %13 = vector.broadcast %12 : i32 to vector<1x128xi32>
      %14 = arith.addi %13, %0 : vector<1x128xi32>
      %c16_i32 = arith.constant 16 : i32
      %15 = vector.broadcast %c16_i32 : i32 to vector<1x128xi32>
      %16 = arith.cmpi slt, %14, %15 : vector<1x128xi32>
      %cst = arith.constant 0.000000e+00 : f32
      %17 = vector.broadcast %cst : f32 to vector<4x128xf32>
      %18 = vector.shape_cast %16 : vector<1x128xi1> to vector<1x128xi1>
      %19 = vector.broadcast %18 : vector<1x128xi1> to vector<4x128xi1>
      %20 = arith.select %19, %11, %17 : vector<4x128xi1>, vector<4x128xf32>
      %c0_7 = arith.constant 0 : index
      %c0_8 = arith.constant 0 : index
      %c0_9 = arith.constant 0 : index
      %21 = vector.load %arg4[%c0_7, %c0_8, %c0_9] : memref<1x8x4xf32, #tpu.memory_space<vmem>>, vector<1x8x4xf32>
      %22 = vector.shape_cast %21 : vector<1x8x4xf32> to vector<8x4xf32>
      %cst_10 = arith.constant dense<0.000000e+00> : vector<8x128xf32>
      %23 = tpu.matmul %22, %20, %cst_10 {dimension_numbers = #tpu.dot_dimension_numbers<[1], [0], [0], [1], [0, 0, 1, 1], [], []>} : vector<8x4xf32>, vector<4x128xf32>, vector<8x128xf32> -> vector<8x128xf32>
      %c0_11 = arith.constant 0 : index
      %c0_12 = arith.constant 0 : index
      %24 = vector.load %arg5[%c0_11, %c0_12] : memref<8x1xf32, #tpu.memory_space<vmem>>, vector<8x1xf32>
      %25 = vector.broadcast %24 : vector<8x1xf32> to vector<8x128xf32>
      %26 = arith.addf %23, %25 : vector<8x128xf32>
      %c0_13 = arith.constant 0 : index
      %c0_14 = arith.constant 0 : index
      %c0_15 = arith.constant 0 : index
      %27 = vector.load %arg6[%c0_13, %c0_14, %c0_15] : memref<1x8x128xf32, #tpu.memory_space<vmem>>, vector<1x8x128xf32>
      %28 = vector.shape_cast %27 : vector<1x8x128xf32> to vector<8x128xf32>
      %29 = vector.shape_cast %26 : vector<8x128xf32> to vector<1x8x128xf32>
      tpu.vector_store %arg6[%c0_13, %c0_14, %c0_15], %29 {strides = array<i32>} : memref<1x8x128xf32, #tpu.memory_space<vmem>>, vector<1x8x128xf32>,
      %30 = arith.extui %16 : vector<1x128xi1> to vector<1x128xi32>
      %31 = arith.sitofp %30 : vector<1x128xi32> to vector<1x128xf32>
      %32 = vector.broadcast %31 : vector<1x128xf32> to vector<8x128xf32>
      %33 = arith.mulf %26, %32 : vector<8x128xf32>
      %cst_16 = arith.constant dense<0.000000e+00> : vector<128xf32>
      %34 = vector.multi_reduction <add>, %33, %cst_16 [0] : vector<8x128xf32> to vector<128xf32>
      %35 = vector.shape_cast %34 : vector<128xf32> to vector<1x128xf32>
      %36 = arith.mulf %26, %26 : vector<8x128xf32>
      %37 = vector.broadcast %31 : vector<1x128xf32> to vector<8x128xf32>
      %38 = arith.mulf %36, %37 : vector<8x128xf32>
      %cst_17 = arith.constant dense<0.000000e+00> : vector<128xf32>
      %39 = vector.multi_reduction <add>, %38, %cst_17 [0] : vector<8x128xf32> to vector<128xf32>
      %40 = vector.shape_cast %39 : vector<128xf32> to vector<1x128xf32>
      %c0_18 = arith.constant 0 : index
      %c0_19 = arith.constant 0 : index
      %c0_20 = arith.constant 0 : index
      %c0_21 = arith.constant 0 : index
      %41 = vector.load %arg7[%c0_18, %c0_19, %c0_20, %c0_21] : memref<1x1x2x128xf32, #tpu.memory_space<vmem>>, vector<1x1x2x128xf32>
      %42 = vector.shape_cast %41 : vector<1x1x2x128xf32> to vector<2x128xf32>
      %43 = tpu.concatenate %35, %40 in 0 : vector<1x128xf32>, vector<1x128xf32> -> vector<2x128xf32>
      %44 = arith.addf %42, %43 : vector<2x128xf32>
      %c0_22 = arith.constant 0 : index
      %c0_23 = arith.constant 0 : index
      %c0_24 = arith.constant 0 : index
      %c0_25 = arith.constant 0 : index
      %45 = vector.load %arg7[%c0_22, %c0_23, %c0_24, %c0_25] : memref<1x1x2x128xf32, #tpu.memory_space<vmem>>, vector<1x1x2x128xf32>
      %46 = vector.shape_cast %45 : vector<1x1x2x128xf32> to vector<2x128xf32>
      %47 = vector.shape_cast %44 : vector<2x128xf32> to vector<1x1x2x128xf32>
      tpu.vector_store %arg7[%c0_22, %c0_23, %c0_24, %c0_25], %47 {strides = array<i32>} : memref<1x1x2x128xf32, #tpu.memory_space<vmem>>, vector<1x1x2x128xf32>,
    } else {
    }
    return
  }
  func.func @transform_0(%arg0: i32, %arg1: i32, %arg2: i32) -> (i32, i32, i32) {
    %c0_i32 = arith.constant 0 : i32
    %c0_i32_0 = arith.constant 0 : i32
    return %arg0, %c0_i32, %arg2 : i32, i32, i32
  }
  func.func @transform_1(%arg0: i32, %arg1: i32, %arg2: i32) -> (i32, i32, i32) {
    %c0_i32 = arith.constant 0 : i32
    %c0_i32_0 = arith.constant 0 : i32
    %c0_i32_1 = arith.constant 0 : i32
    return %c0_i32, %arg1, %c0_i32_0 : i32, i32, i32
  }
  func.func @transform_2(%arg0: i32, %arg1: i32, %arg2: i32) -> (i32, i32) {
    %c0_i32 = arith.constant 0 : i32
    %c0_i32_0 = arith.constant 0 : i32
    return %arg1, %c0_i32 : i32, i32
  }
  func.func @transform_3(%arg0: i32, %arg1: i32, %arg2: i32) -> (i32, i32, i32) {
    %c0_i32 = arith.constant 0 : i32
    return %arg0, %arg1, %arg2 : i32, i32, i32
  }
  func.func @transform_4(%arg0: i32, %arg1: i32, %arg2: i32) -> (i32, i32, i32, i32) {
    %c0_i32 = arith.constant 0 : i32
    %c0_i32_0 = arith.constant 0 : i32
    %c0_i32_1 = arith.constant 0 : i32
    return %arg0, %arg1, %c0_i32, %c0_i32_0 : i32, i32, i32, i32
  }
}

module attributes {stable_mosaic.version = 11 : i64} {
  func.func @_norm_act_kernel(%arg0: i32, %arg1: i32, %arg2: memref<1x8x128xf32, #tpu.memory_space<vmem>>, %arg3: memref<1x8x1xf32, #tpu.memory_space<vmem>>, %arg4: memref<1x8x1xf32, #tpu.memory_space<vmem>>, %arg5: memref<8x1xf32, #tpu.memory_space<vmem>>, %arg6: memref<1x8x128xf32, #tpu.memory_space<vmem>>) attributes {dimension_semantics = [#tpu.dimension_semantics<parallel>, #tpu.dimension_semantics<parallel>], iteration_bounds = array<i64: 2, 1>, scalar_prefetch = 0 : i64, scratch_operands = 0 : i64, tpu.core_type = #tpu.core_type<tc>, window_params = [{transform_indices = @transform_0, window_bounds = array<i64: 1, 8, 128>}, {transform_indices = @transform_1, window_bounds = array<i64: 1, 8, 1>}, {transform_indices = @transform_2, window_bounds = array<i64: 1, 8, 1>}, {pipeline_mode = #tpu.pipeline_mode<synchronous>, transform_indices = @transform_3, window_bounds = array<i64: 8, 1>}, {transform_indices = @transform_4, window_bounds = array<i64: 1, 8, 128>}]} {
    %c0 = arith.constant 0 : index
    %c0_0 = arith.constant 0 : index
    %c0_1 = arith.constant 0 : index
    %0 = vector.load %arg3[%c0, %c0_0, %c0_1] : memref<1x8x1xf32, #tpu.memory_space<vmem>>, vector<1x8x1xf32>
    %1 = vector.shape_cast %0 : vector<1x8x1xf32> to vector<8x1xf32>
    %c0_2 = arith.constant 0 : index
    %c0_3 = arith.constant 0 : index
    %c0_4 = arith.constant 0 : index
    %2 = vector.load %arg2[%c0_2, %c0_3, %c0_4] : memref<1x8x128xf32, #tpu.memory_space<vmem>>, vector<1x8x128xf32>
    %3 = vector.shape_cast %2 : vector<1x8x128xf32> to vector<8x128xf32>
    %4 = vector.broadcast %1 : vector<8x1xf32> to vector<8x128xf32>
    %5 = arith.mulf %4, %3 : vector<8x128xf32>
    %c0_5 = arith.constant 0 : index
    %c0_6 = arith.constant 0 : index
    %c0_7 = arith.constant 0 : index
    %6 = vector.load %arg4[%c0_5, %c0_6, %c0_7] : memref<1x8x1xf32, #tpu.memory_space<vmem>>, vector<1x8x1xf32>
    %7 = vector.shape_cast %6 : vector<1x8x1xf32> to vector<8x1xf32>
    %8 = vector.broadcast %7 : vector<8x1xf32> to vector<8x128xf32>
    %9 = arith.addf %5, %8 : vector<8x128xf32>
    %c0_8 = arith.constant 0 : index
    %c0_9 = arith.constant 0 : index
    %10 = vector.load %arg5[%c0_8, %c0_9] : memref<8x1xf32, #tpu.memory_space<vmem>>, vector<8x1xf32>
    %cst = arith.constant 0.000000e+00 : f32
    %11 = vector.broadcast %cst : f32 to vector<8x128xf32>
    %12 = arith.cmpf oge, %9, %11 : vector<8x128xf32>
    %13 = vector.broadcast %10 : vector<8x1xf32> to vector<8x128xf32>
    %14 = arith.mulf %13, %9 : vector<8x128xf32>
    %15 = arith.select %12, %9, %14 : vector<8x128xi1>, vector<8x128xf32>
    %c0_10 = arith.constant 0 : index
    %c0_11 = arith.constant 0 : index
    %c0_12 = arith.constant 0 : index
    %16 = vector.load %arg6[%c0_10, %c0_11, %c0_12] : memref<1x8x128xf32, #tpu.memory_space<vmem>>, vector<1x8x128xf32>
    %17 = vector.shape_cast %16 : vector<1x8x128xf32> to vector<8x128xf32>
    %18 = vector.shape_cast %15 : vector<8x128xf32> to vector<1x8x128xf32>
    tpu.vector_store %arg6[%c0_10, %c0_11, %c0_12], %18 {strides = array<i32>} : memref<1x8x128xf32, #tpu.memory_space<vmem>>, vector<1x8x128xf32>,
    return
  }
  func.func @transform_0(%arg0: i32, %arg1: i32) -> (i32, i32, i32) {
    %c0_i32 = arith.constant 0 : i32
    %c0_i32_0 = arith.constant 0 : i32
    return %arg0, %c0_i32, %arg1 : i32, i32, i32
  }
  func.func @transform_1(%arg0: i32, %arg1: i32) -> (i32, i32, i32) {
    %c0_i32 = arith.constant 0 : i32
    %c0_i32_0 = arith.constant 0 : i32
    %c0_i32_1 = arith.constant 0 : i32
    return %arg0, %c0_i32, %c0_i32_0 : i32, i32, i32
  }
  func.func @transform_2(%arg0: i32, %arg1: i32) -> (i32, i32, i32) {
    %c0_i32 = arith.constant 0 : i32
    %c0_i32_0 = arith.constant 0 : i32
    %c0_i32_1 = arith.constant 0 : i32
    return %arg0, %c0_i32, %c0_i32_0 : i32, i32, i32
  }
  func.func @transform_3(%arg0: i32, %arg1: i32) -> (i32, i32) {
    %c0_i32 = arith.constant 0 : i32
    %c0_i32_0 = arith.constant 0 : i32
    %c0_i32_1 = arith.constant 0 : i32
    return %c0_i32, %c0_i32_0 : i32, i32
  }
  func.func @transform_4(%arg0: i32, %arg1: i32) -> (i32, i32, i32) {
    %c0_i32 = arith.constant 0 : i32
    %c0_i32_0 = arith.constant 0 : i32
    return %arg0, %c0_i32, %arg1 : i32, i32, i32
  }
}

</mosaic_0001>

<bundles_post_ra>
// kernel: conv_glob_ln.3
= control target key start
LH: loop header
LB: loop body
LE: loop exit
PB: predicated region body
PF: predicated region fallthrough
CT: control target
= control target key end

     0   :  { %9 = vsyncpa [#allocation3], 0  ;;  %s763_s0 = inlined_call_operand.hbm [shape: f32[2,8,16], index: 0, kind: input, shape index: {}, may-alias: {0,4}]   ;;  %s764_s1 = inlined_call_operand.vmem [shape: f32[2,8,1], index: 1, kind: input, shape index: {}]   ;;  %s765_s2 = inlined_call_operand.vmem [shape: f32[2,8,1], index: 2, kind: input, shape index: {}]   ;;  %s766_s3 = inlined_call_operand.vmem [shape: f32[8,1], index: 3, kind: input, shape index: {}]   ;;  %s767_s4 = inlined_call_operand.hbm [shape: f32[2,8,16], index: 4, kind: output, shape index: {}, may-alias: {0,4}]  }
   0x1   :  { %11 = vsyncpa [#allocation3 + $0x1], 0 }
   0x2   :  { %12 = vsyncpa [#allocation4], 0 }
   0x3   :  { %14 = vsyncpa [#allocation4 + $0x1], 0  ;;  %s632_s15 = smov 0   ;;  %s634_s16 = smov 0  }
   0x4   :  { %s636_s17 = smov 0   ;;  %s638_s18 = smov 0  }
   0x5   :  { %s640_s19 = smov 0   ;;  %s642_s20 = smov 0  }
   0x6 LB: > { %s412_s21 = sadd.s32 4294967295, %s604_s20   ;;  %s413_s22 = sadd.s32 4294967294, %s604_s20   ;;  %s604_s20 = sphi %s642_s20, %s20_s20   ;;  %s600_s19 = sphi %s640_s19, %s776_s19   ;;  %s596_s18 = sphi %s638_s18, %s775_s18   ;;  %s592_s17 = sphi %s636_s17, %s774_s17   ;;  %s588_s16 = sphi %s634_s16, %s773_s16   ;;  %s584_s15 = sphi %s632_s15, %s772_s15  }
   0x7   : > { %s32_s23 = sadd.s32 1, %s600_s19  ;;  %s41_s24 = sadd.s32 1, %s592_s17 }
   0x8   : > { %p34_p0 = scmp.ge.s32.totalorder %s32_s23, 2  ;;  %p48_p1 = scmp.ne.s32.totalorder %s592_s17, %s588_s16 }
   0x9   : > { %p49_p2 = scmp.eq.s32.totalorder %s604_s20, 0  ;;  %p54_p3 = scmp.ne.s32.totalorder %s588_s16, %s584_s15 }
   0xa   : > { %s778_s23 = smov (%p34_p0, %s32_s23), 0  ;;  %p55_p5 = scmp.eq.s32.totalorder %s412_s21, 0 }
   0xb   : > { %p673_p4 = por %p49_p2, %p48_p1  ;;  %s36_s26 = ssub.s32 %s600_s19, %s778_s23 }
   0xc   : > { %p153_p6 = scmp.eq.s32.totalorder %s412_s21, 1  ;;  %p39_p7 = scmp.eq.s32.totalorder %s36_s26, 0 }
   0xd   : > { %p679_p8 = por %p55_p5, %p54_p3  ;;  %p159_p10 = scmp.eq.s32.totalorder %s413_s22, 1 }
   0xe   : > { %p683_p9 = por %p153_p6, %p48_p1  ;;  %p415_p12 = scmp.ge.s32.totalorder %s604_s20, 2 }
   0xf   : > { %s688_s29 = scalar_select %p39_p7, %s592_s17, %s41_s24  }
  0x10   : > { %p690_p11 = por %p159_p10, %p54_p3  ;;  %p439_p13 = scmp.lt.s32.totalorder %s604_s20, 2 }
  0x11   : > { %s182_s5 = sand.u32 1, %s592_s17   ;;  %s417_s7 = sshll.u32 %s600_s19, 3 }
  0x12   : > { %s416_s6 = sshll.u32 %s182_s5, 3  ;;  %s191_s10 = scalar_lea.hbm %s763_s0, %s417_s7 }
  0x13   : > { %s186_s11 = scalar_lea.vmem [#allocation2], %s416_s6  ;;  %s193_s13 = sshll.u32 %s191_s10, 4  ;;  %s194_s13 = int_to_ptr.hbm [resolvable:$true] %s193_s13 }
  0x14   : > { %s195_s12 = sshll.u32 %s186_s11, 4  ;;  %p432_p0 = pnand %p439_p13, %p673_p4  ;;  %s196_s12 = int_to_ptr.vmem [resolvable:$true] %s195_s12 }
  0x15   : > { %p418_p1 = scmp.ge.s32.totalorder %s604_s20, 1  ;;  %p214_p2 = scmp.lt.s32.totalorder %s604_s20, 3 }
  0x16   : > { %s183_s14 = scalar_lea.sflag [#allocation3], %s182_s5 }
  0x17   : > { %434 = dma.hbm_to_vmem [thread:$0]  (!%p432_p0), %s194_s13, 128, %s196_s12, %s183_s14  }
  0x18   : > { %p215_p3 = pnand %p418_p1, %p214_p2 }
  0x19   : > { %s706_s21 = sand.u32 (!%p215_p3), 1, %s588_s16  }
  0x1a   : > { %218 = sbr.rel (%p215_p3) target bundleno = 170 (0xaa), region = 36  ;;  %s419_s22 = sshll.u32 (!%p215_p3), %s706_s21, 3 }
  0x1b   : > { %s221_s24 = scalar_lea.sflag (!%p215_p3), [#allocation3], %s706_s21  ;;  %s224_s26 = scalar_lea.vmem (!%p215_p3), [#allocation2], %s419_s22 }
  0x1f   : > { %575 = dma.done.wait (%p679_p8), %s221_s24, 128  }
  0x20   : > { %577 = vsyncadd (%p679_p8), %s221_s24, 4294967168  ;;  %p258_p4 = scmp.lt.s32.totalorder %s596_s18, 1  ;;  %v606_v0 = vmov 0   ;;  %v281_v2 = vld [vmem:[%s766_s3] sm:$0xff]  ;;  %s424_s13 = sshll.u32 %s596_s18, 3 }
  0x21   : > { %490 = vset.pattern.permute.xlu0 %v606_v0  ;;  %491 = vset.pattern.permute.xlu1 %v606_v0  ;;  %v267_v5 = vld [vmem:[%s224_s26] sm:$0xff]  ;;  %s257_s6 = scalar_lea.vmem [#allocation5], %s419_s22  ;;  %s542_s22 = scalar_lea.hbm %s767_s4, 16 }
  0x22   : > { %s259_s25 = scalar_select %p258_p4, %s596_s18, 1  ;;  %285 = vperm.xlu1 %491, %v281_v2  }
  0x23   : > { %s305_s7 = sshll.u32 %s257_s6, 4  ;;  %s292_s18 = scalar_lea.sflag [#allocation4], %s706_s21  ;;  %s306_s7 = int_to_ptr.vmem [resolvable:$true] %s305_s7 }
  0x24   : > { %s421_s5 = sshll.u32 %s259_s25, 3  ;;  %s303_s25 = scalar_lea.hbm %s767_s4, %s424_s13 }
  0x25   : > { %s261_s8 = scalar_lea.vmem %s764_s1, %s421_s5  ;;  %s265_s12 = scalar_lea.vmem %s765_s2, %s421_s5 }
  0x26   : > { %v266_v1 = vld [vmem:[%s261_s8] sm:$0xff]  ;;  %s307_s8 = sshll.u32 %s303_s25, 4  ;;  %s308_s8 = int_to_ptr.hbm [resolvable:$true] %s307_s8 }
  0x27   : > { %270 = vperm.xlu0 %490, %v266_v1   ;;  %v274_v3 = vld [vmem:[%s265_s12] sm:$0xff]  ;;  %s536_s26 = sshra.s32 %s308_s8, 4  ;;  %s537_s26 = int_to_ptr.hbm [resolvable:$true] %s536_s26 }
  0x28   : > { %s538_s5 = scalar_lea.hbm %s537_s26, 8  ;;  %p543_p8 = scmp.lt.s32.totalorder %s537_s26, %s767_s4 }
  0x29   : > { %p539_p5 = scmp.ne.s32.totalorder %s537_s26, %s538_s5  ;;  %p544_p10 = scmp.lt.s32.totalorder %s542_s22, %s538_s5 }
  0x2b   : > { %p540_p6 = pnand %p539_p5, %p683_p9  ;;  %p545_p13 = por %p544_p10, %p543_p8 }
  0x2d   : > { %p541_p7 = pneg %p540_p6 }
  0x2f   : > { %277 = vperm.xlu0 %490, %v274_v3   ;;  %p546_p0 = pnand %p545_p13, %p541_p7 }
  0x94   : > { %v286_v8 = vpop.permute.xlu1 %285 }
  0x99   : > { %v271_v4 = vpop.permute.xlu0 %270 }
  0x9a   : > { %v273_v6 = vmul.f32 %v271_v4, %v267_v5 }
  0xa1   : > { %v278_v7 = vpop.permute.xlu0 %277 }
  0xa2   : > { %v280_v9 = vadd.f32 %v278_v7, %v273_v6 }
  0xa4   : > { %vm282_vm0 = vcmp.ge.f32.partialorder %v280_v9, 0.0  ;;  %v288_v10 = vmul.f32 %v286_v8, %v280_v9 }
  0xa6   : > { %v289_v11 = vsel %vm282_vm0, %v280_v9, %v288_v10 }
  0xa7   : > { %290 = vst [vmem:[%s257_s6] sm:$0xff] %v289_v11 }
  0xa8   : > { %549 = shalt.err (!%p546_p0)
}
  0xa9   : > { %429 = dma.vmem_to_hbm [thread:$0]  (%p683_p9), %s306_s7, 128, %s308_s8, %s292_s18  }
  0xaa PF: > { %s319_s21 = sand.u32 1, %s584_s15   ;;  %p436_p1 = pnand %p415_p12, %p690_p11 }
  0xab   : > { %s320_s12 = scalar_lea.sflag [#allocation4], %s319_s21 }
  0xac   : > { %p437_p2 = pneg %p436_p1 }
  0xae   : > { %579 = dma.done.wait (%p437_p2), %s320_s12, 128  }
  0xaf   : > { %581 = vsyncadd (%p437_p2), %s320_s12, 4294967168  ;;  %s20_s20 = sadd.s32 1, %s604_s20   ;;  %s772_s15 = smov %s588_s16 }
  0xb0   : > { %p17_p3 = scmp.ge.s32.totalorder %s20_s20, 4   ;;  %s773_s16 = smov %s592_s17 }
  0xb1   : > { %s774_s17 = smov %s688_s29  ;;  %s775_s18 = smov %s600_s19 }
  0xb2   : > { %s776_s19 = smov %s778_s23  ;;  %19 = sbr.rel (!%p17_p3) target bundleno = 6 (0x6), region = 87 }
  0xb7   :  { %326 = vsyncpa [#allocation3], 1 }
  0xb8   :  { %328 = vsyncpa [#allocation3 + $0x1], 1 }
  0xb9   :  { %329 = vsyncpa [#allocation4], 1 }
  0xba   :  { %331 = vsyncpa [#allocation4 + $0x1], 1 }

// kernel: conv_glob_ln.2
= control target key start
LH: loop header
LB: loop body
LE: loop exit
PB: predicated region body
PF: predicated region fallthrough
CT: control target
= control target key end

     0   :  { %10 = vsyncpa [#allocation3], 0  ;;  %s873_s0 = inlined_call_operand.vmem [shape: f32[2,4,16], index: 0, kind: input, shape index: {}]   ;;  %s874_s1 = inlined_call_operand.vmem [shape: f32[1,8,4], index: 1, kind: input, shape index: {}]   ;;  %s875_s2 = inlined_call_operand.vmem [shape: f32[8,1], index: 2, kind: input, shape index: {}]   ;;  %s876_s3 = inlined_call_operand.hbm [shape: f32[2,8,16], index: 3, kind: output, shape index: {0}]   ;;  %s877_s4 = inlined_call_operand.vmem [shape: f32[2,1,2,128], index: 4, kind: output, shape index: {1}]  }
   0x1   :  { %12 = vsyncpa [#allocation3 + $0x1], 0  ;;  %s762_s15 = smov 0   ;;  %s764_s16 = smov 0  }
   0x2   :  { %s766_s17 = smov 0   ;;  %s768_s18 = smov 0  }
   0x3   :  { %s770_s19 = smov 0   ;;  %s772_s20 = smov 0  }
   0x4 LB: > { %s578_s21 = sadd.s32 4294967295, %s733_s20   ;;  %s579_s22 = sadd.s32 4294967294, %s733_s20   ;;  %s733_s20 = sphi %s772_s20, %s18_s20   ;;  %s729_s19 = sphi %s770_s19, %s884_s19   ;;  %s725_s18 = sphi %s768_s18, %s883_s18   ;;  %s721_s17 = sphi %s766_s17, %s882_s17   ;;  %s717_s16 = sphi %s764_s16, %s881_s16   ;;  %s713_s15 = sphi %s762_s15, %s880_s15  }
   0x5   : > { %s37_s23 = sadd.s32 1, %s729_s19  ;;  %s128_s24 = sadd.s32 1, %s721_s17 }
   0x6   : > { %p39_p0 = scmp.ge.s32.totalorder %s37_s23, 2  ;;  %p138_p1 = scmp.ne.s32.totalorder %s721_s17, %s717_s16 }
   0x7   : > { %p139_p2 = scmp.eq.s32.totalorder %s578_s21, 1  ;;  %p144_p3 = scmp.ne.s32.totalorder %s717_s16, %s713_s15 }
   0x8   : > { %s886_s23 = smov (%p39_p0, %s37_s23), 0  ;;  %p145_p5 = scmp.eq.s32.totalorder %s579_s22, 1 }
   0x9   : > { %p802_p4 = por %p139_p2, %p138_p1  ;;  %s121_s26 = ssub.s32 %s729_s19, %s886_s23 }
   0xa   : > { %p584_p6 = scmp.ge.s32.totalorder %s733_s20, 1  ;;  %p126_p7 = scmp.eq.s32.totalorder %s121_s26, 0 }
   0xb   : > { %p809_p8 = por %p145_p5, %p144_p3  ;;  %p215_p9 = scmp.lt.s32.totalorder %s733_s20, 3 }
   0xc   : > { %s815_s28 = scalar_select %p126_p7, %s721_s17, %s128_s24  }
   0xd   : > { %p216_p10 = pnand %p584_p6, %p215_p9 }
   0xe   : > { %p258_p11 = scmp.lt.s32.totalorder (!%p216_p10), %s725_s18, 1  ;;  %s246_s22 = sand.u32 (!%p216_p10), 1, %s717_s16  }
   0xf   : > { %219 = sbr.rel (%p216_p10) target bundleno = 175 (0xaf), region = 32  ;;  %s594_s24 = sshll.u32 (!%p216_p10), %s725_s18, 3 }
  0x10   : > { %s585_s26 = sshll.u32 (!%p216_p10), %s246_s22, 3  ;;  %s415_s9 = scalar_lea.sflag (!%p216_p10), [#allocation3], %s246_s22 }
  0x11   : > { %s675_s14 = scalar_lea.hbm (!%p216_p10), %s876_s3, 16 }
  0x14   : > { %v280_v0 = vlaneseq  ;;  %v358_v1 = vld [vmem:[%s875_s2] sm:$0xff]  ;;  %s259_s5 = scalar_select %p258_p11, %s725_s18, 1  ;;  %v735_v3 = vmov 0   ;;  %vm368_vm1 = vcmask 1043456   ;;  %v736_v4 = vmov 0.0  }
  0x15   : > { %654 = vset.pattern.permute.xlu0 %v735_v3  ;;  %v357_v7 = vld [vmem:[%s874_s1] sm:$0xff]  ;;  %vm364_vm2 = vcmask 31744  }
  0x16   : > { %v281_v2 = vand.u32 127, %v280_v0  ;;  %361 = vperm.xlu0 %654, %v358_v1   ;;  %s586_s6 = sshll.u32 %s259_s5, 2  ;;  %s587_s7 = sshll.u32 %s259_s5, 1 }
  0x17   : > { %s264_s10 = scalar_lea.vmem %s873_s0, %s586_s6  ;;  %s828_s13 = scalar_lea.vmem %s877_s4, %s587_s7 }
  0x18   : > { %vm353_vm0 = vcmp.lt.s32.totalorder %v281_v2, 16  ;;  %286 = vst [vmem:[%s828_s13] sm:$0x3] %v736_v4  ;;  %v349_v6 = vld [vmem:[%s264_s10] sm:$0xf]  ;;  %s434_s5 = scalar_lea.hbm %s876_s3, %s594_s24  ;;  %s248_s6 = scalar_lea.vmem [#allocation2], %s585_s26 }
  0x19   : > { %v592_v5 = vsel %vm353_vm0, 1.0, %v736_v4  ;;  %v356_v8 = vsel %vm353_vm0, %v349_v6, 0.0  ;;  %s436_s7 = sshll.u32 %s248_s6, 4  ;;  %s438_s8 = sshll.u32 %s434_s5, 4  ;;  %s437_s7 = int_to_ptr.vmem [resolvable:$true] %s436_s7  ;;  %s439_s8 = int_to_ptr.hbm [resolvable:$true] %s438_s8 }
  0x1a   : > { %590 = vmatpush.msk.msra.mxu0 %vm368_vm1, %v356_v8  ;;  %s669_s10 = sshra.s32 %s439_s8, 4  ;;  %s670_s10 = int_to_ptr.hbm [resolvable:$true] %s669_s10 }
  0x1b   : > { %591 = vmatmul.msk.f32.vlgmr.msra.gmra.mxu0 %vm364_vm2, %v357_v7  ;;  %s671_s18 = scalar_lea.hbm %s670_s10, 8  ;;  %p676_p1 = scmp.lt.s32.totalorder %s670_s10, %s876_s3 }
  0x1c   : > { %p672_p12 = scmp.ne.s32.totalorder %s670_s10, %s671_s18  ;;  %p677_p2 = scmp.lt.s32.totalorder %s675_s14, %s671_s18 }
  0x1e   : > { %p673_p13 = pnand %p672_p12, %p802_p4  ;;  %p678_p3 = por %p677_p2, %p676_p1 }
  0x20   : > { %p674_p0 = pneg %p673_p13 }
  0x22   : > { %p679_p5 = pnand %p678_p3, %p674_p0 }
  0x88   : > { %v362_v9 = vpop.permute.xlu0 %361 }
  0x98   : > { %v389_v10 = vpop.f32.mrf.mxu0 }
  0x99   : > { %v390_v11 = vadd.f32 %v389_v10, %v362_v9 }
  0x9b   : > { %v394_v12 = vmul.f32 %v592_v5, %v390_v11  ;;  %v401_v13 = vmul.f32 %v390_v11, %v390_v11  ;;  %392 = vst [vmem:[%s248_s6] sm:$0xff] %v390_v11 }
  0x9c   : > { %682 = shalt.err (!%p679_p5)
}
  0x9d   : > { %597 = dma.vmem_to_hbm [thread:$0]  (%p802_p4), %s437_s7, 128, %s439_s8, %s415_s9   ;;  %v395_v14 = vrot.slane %v394_v12, 4  ;;  %v402_v15 = vmul.f32 %v592_v5, %v401_v13  ;;  %vm410_vm3 = vcmask 1040384   ;;  %v409_v25 = vld [vmem:[%s828_s13] sm:$0x3] }
  0x9f   : > { %v396_v16 = vadd.f32 %v395_v14, %v394_v12  ;;  %v403_v17 = vrot.slane %v402_v15, 4 }
  0xa1   : > { %v397_v18 = vrot.slane %v396_v16, 2  ;;  %v404_v19 = vadd.f32 %v403_v17, %v402_v15 }
  0xa3   : > { %v398_v20 = vadd.f32 %v397_v18, %v396_v16  ;;  %v405_v21 = vrot.slane %v404_v19, 2 }
  0xa5   : > { %v399_v22 = vrot.slane %v398_v20, 1  ;;  %v406_v23 = vadd.f32 %v405_v21, %v404_v19 }
  0xa7   : > { %v407_v24 = vrot.slane %v406_v23, 1  ;;  %v400_v26 = vadd.f32 %v399_v22, %v398_v20 }
  0xa9   : > { %v408_v27 = vadd.f32 %v407_v24, %v406_v23 }
  0xab   : > { %v411_v28 = vsel %vm410_vm3, %v400_v26, %v408_v27 }
  0xac   : > { %v412_v29 = vadd.f32 %v411_v28, %v409_v25 }
  0xae   : > { %413 = vst [vmem:[%s828_s13] sm:$0x3] %v412_v29 }
  0xaf PF: > { %p603_p4 = scmp.ge.s32.totalorder %s733_s20, 2  ;;  %s453_s25 = sand.u32 1, %s713_s15  }
  0xb0   : > { %s454_s22 = scalar_lea.sflag [#allocation3], %s453_s25 }
  0xb1   : > { %p600_p6 = pnand %p603_p4, %p809_p8 }
  0xb3   : > { %p601_p7 = pneg %p600_p6 }
  0xb5   : > { %708 = dma.done.wait (%p601_p7), %s454_s22, 128  }
  0xb6   : > { %710 = vsyncadd (%p601_p7), %s454_s22, 4294967168  ;;  %s18_s20 = sadd.s32 1, %s733_s20   ;;  %s880_s15 = smov %s717_s16 }
  0xb7   : > { %p15_p9 = scmp.ge.s32.totalorder %s18_s20, 4   ;;  %s881_s16 = smov %s721_s17 }
  0xb8   : > { %s882_s17 = smov %s815_s28  ;;  %s883_s18 = smov %s729_s19 }
  0xb9   : > { %s884_s19 = smov %s886_s23  ;;  %17 = sbr.rel (!%p15_p9) target bundleno = 4 (0x4), region = 97 }
  0xbe   :  { %470 = vsyncpa [#allocation3], 1 }
  0xbf   :  { %472 = vsyncpa [#allocation3 + $0x1], 1 }

</bundles_post_ra>
